<compile_context>
chip_gen: v5e
topology: v5e:2x2
jax: 0.10.0
libtpu: 0.0.40
codegen_flags: <defaults>
</compile_context>

<pallas_src>
import functools

import jax
import jax.numpy as jnp
import numpy as np
from jax.experimental import pallas as pl
from jax.experimental.pallas import tpu as pltpu


# ---------------------------------------------------------------------------
# Pallas kernel: pre-linear + all residual blocks + masked skip reduction,
# one batch sample per grid step.
# ---------------------------------------------------------------------------
def _wavenet_kernel(dilations, res, skip,
                    x_ref, pre_w_ref, pre_b_ref, fgw_ref, sr_w_ref, sr_b_ref,
                    out_ref, skip_ref):
    # x_ref   : (1, T, D)      this sample, channels-last
    # fgw_ref : (L, res, 4*res)   fused [filter_tap0 | gate_tap0 | filter_tap1 | gate_tap1]
    # sr_w_ref: (L, res, res+skip) fused [residual | skip] 1x1 convs
    # sr_b_ref: (L, 1,  res+skip)
    # out_ref : (1, 1, skip)   per-sample skip total (post-net runs in XLA)
    # skip_ref: (T, skip) f32  VMEM scratch accumulator
    T = x_ref.shape[1]
    pad = sum(dilations)          # first valid (right-aligned) row index

    # pre: nn.Linear(D, res).  torch's transpose(1,2) is only an NCW<->NWC
    # layout change; we stay channels-last throughout.
    h = (jnp.dot(x_ref[0], pre_w_ref[...],
                 preferred_element_type=jnp.float32)
         + pre_b_ref[...])                                     # (T, res) f32

    skip_ref[...] = jnp.zeros_like(skip_ref)

    # Fixed-length, right-aligned residual stream: row p always holds original
    # time step p.  A Conv1d(kernel_size=2, dilation=d) output at row p needs
    # input rows p-d and p; the p-d tap is obtained by rolling the matmul
    # RESULT by d along the row axis (roll commutes with the channel matmul).
    # Rows p < cumulative-dilation are garbage, but they feed only garbage
    # rows (all ops are row-local) and are excluded by the final mask.
    for l, d in enumerate(dilations):                  # static unroll
        hfg = jnp.dot(h.astype(fgw_ref.dtype), fgw_ref[l],
                      preferred_element_type=jnp.float32)      # (T, 4*res)
        z = pltpu.roll(hfg[:, :2 * res], shift=d, axis=0) + hfg[:, 2 * res:]
        # gate: sigmoid(x) == 0.5*tanh(0.5*x) + 0.5  (one EUP op, not exp+rcp)
        gated = jnp.tanh(z[:, :res]) * (0.5 * jnp.tanh(0.5 * z[:, res:]) + 0.5)
        sr = (jnp.dot(gated.astype(sr_w_ref.dtype), sr_w_ref[l],
                      preferred_element_type=jnp.float32)
              + sr_b_ref[l])                                   # (T, res+skip)
        h = sr[:, :res] + h           # residual_conv(out) + inputs[..., -len:]
        skip_ref[...] = skip_ref[...] + sr[:, res:]

    # sum(s[:, :, -t_final:]).sum(time): mask invalid (front) rows, reduce.
    valid = jax.lax.broadcasted_iota(jnp.int32, (T, 1), 0) >= pad
    out_ref[0] = jnp.sum(jnp.where(valid, skip_ref[...], 0.0),
                         axis=0, keepdims=True)                # (1, skip)


# ---------------------------------------------------------------------------
# Wrapper / parameter setup (plain JAX glue).
# ---------------------------------------------------------------------------
def get_dilations(x_len, dilations=None):
    if dilations is not None:
        return list(dilations)
    if x_len > 20:
        return [1, 2, 4, 8, 16, 1, 2, 4, 8]
    elif x_len < 6:
        return [1, 2]
    else:
        return [1, 2, 4]


def init_params(key, D, res_channels, skip_channels, n_layers):
    keys = jax.random.split(key, 12)
    s = 0.1
    f32 = jnp.float32
    return dict(
        pre_w=jax.random.normal(keys[0], (D, res_channels), f32) * s,
        pre_b=jax.random.normal(keys[1], (1, res_channels), f32) * s,
        filter_w=jax.random.normal(keys[2], (n_layers, 2, res_channels, res_channels), f32) * s,
        gate_w=jax.random.normal(keys[3], (n_layers, 2, res_channels, res_channels), f32) * s,
        skip_w=jax.random.normal(keys[4], (n_layers, res_channels, skip_channels), f32) * s,
        skip_b=jax.random.normal(keys[5], (n_layers, 1, skip_channels), f32) * s,
        res_w=jax.random.normal(keys[6], (n_layers, res_channels, res_channels), f32) * s,
        res_b=jax.random.normal(keys[7], (n_layers, 1, res_channels), f32) * s,
        post_w1=jax.random.normal(keys[8], (skip_channels, skip_channels), f32) * s,
        post_b1=jax.random.normal(keys[9], (1, skip_channels), f32) * s,
        post_w2=jax.random.normal(keys[10], (skip_channels, skip_channels), f32) * s,
        post_b2=jax.random.normal(keys[11], (1, skip_channels), f32) * s,
    )


def wavenet_encoder_pallas(x, params, dilations, compute_dtype=jnp.bfloat16):
    B, T, D = x.shape
    res = params['pre_w'].shape[1]
    skip = params['skip_w'].shape[2]
    L = len(dilations)
    pad = sum(dilations)
    t_final = T - pad
    assert t_final > 0, "sequence too short for the chosen dilations"
    cdt = compute_dtype

    # Host-side weight fusion.
    #   fgw: [filter tap0 | gate tap0 | filter tap1 | gate tap1]  -> N = 4*res
    fgw = jnp.concatenate([params['filter_w'][:, 0], params['gate_w'][:, 0],
                           params['filter_w'][:, 1], params['gate_w'][:, 1]],
                          axis=-1).astype(cdt)                 # (L, res, 4*res)
    #   sr: [residual | skip] so the residual half is lane-0 aligned.
    sr_w = jnp.concatenate([params['res_w'], params['skip_w']],
                           axis=-1).astype(cdt)                # (L, res, res+skip)
    sr_b = jnp.concatenate([params['res_b'], params['skip_b']],
                           axis=-1)                            # (L, 1, res+skip) f32

    x_c = x.astype(cdt)
    pre_w = params['pre_w'].astype(cdt)
    pre_b = params['pre_b']                                    # f32

    kernel = functools.partial(_wavenet_kernel, tuple(dilations), res, skip)

    flops = int(B * (2 * T * D * res
                     + L * (2 * T * res * (4 * res)
                            + 2 * T * res * (res + skip))))
    transcendentals = int(B * L * 2 * T * res)
    inputs = (x_c, pre_w, pre_b, fgw, sr_w, sr_b)
    bytes_accessed = int(sum(a.size * a.dtype.itemsize for a in inputs)
                         + B * skip * 4)

    total = pl.pallas_call(
        kernel,
        out_shape=jax.ShapeDtypeStruct((B, 1, skip), jnp.float32),
        grid_spec=pltpu.PrefetchScalarGridSpec(
            num_scalar_prefetch=0,
            grid=(B,),
            in_specs=[
                pl.BlockSpec((1, T, D), lambda b: (b, 0, 0)),            # x (this sample)
                pl.BlockSpec((D, res), lambda b: (0, 0)),                # pre_w (resident)
                pl.BlockSpec((1, res), lambda b: (0, 0)),                # pre_b
                pl.BlockSpec((L, res, 4 * res), lambda b: (0, 0, 0)),    # fused filter|gate
                pl.BlockSpec((L, res, res + skip), lambda b: (0, 0, 0)), # fused res|skip
                pl.BlockSpec((L, 1, res + skip), lambda b: (0, 0, 0)),
            ],
            out_specs=pl.BlockSpec((1, 1, skip), lambda b: (b, 0, 0)),
            scratch_shapes=[pltpu.VMEM((T, skip), jnp.float32)],
        ),
        compiler_params=pltpu.CompilerParams(
            dimension_semantics=("parallel",),        # batch -> both v7x TCs
            vmem_limit_bytes=48 * 1024 * 1024,
        ),
        cost_estimate=pl.CostEstimate(flops=flops,
                                      transcendentals=transcendentals,
                                      bytes_accessed=bytes_accessed),
    )(*inputs)                                                  # (B, 1, skip)
    total = total[:, 0, :]

    # post: ReLU -> Linear -> ReLU -> Linear on (B, skip); tiny, left to XLA.
    p = jnp.maximum(total, 0.0)
    p = p @ params['post_w1'] + params['post_b1'][0]
    p = jnp.maximum(p, 0.0)
    p = p @ params['post_w2'] + params['post_b2'][0]
    return p


# ---------------------------------------------------------------------------
# Pure-JAX reference (mirrors the PyTorch forward exactly) for verification.
# ---------------------------------------------------------------------------
def wavenet_encoder_ref(x, params, dilations):
    B, T, D = x.shape
    t_final = T - sum(dilations)
    h = x @ params['pre_w'] + params['pre_b'][0]               # (B, T, res)
    skip_acc = jnp.zeros((B, t_final, params['post_w2'].shape[1]), jnp.float32)
    cur_len = T
    for l, d in enumerate(dilations):
        new_len = cur_len - d
        left = h[:, :new_len]
        right = h[:, d:cur_len]
        filt = jnp.tanh(left @ params['filter_w'][l, 0] + right @ params['filter_w'][l, 1])
        gate = jax.nn.sigmoid(left @ params['gate_w'][l, 0] + right @ params['gate_w'][l, 1])
        out = filt * gate
        skip = out @ params['skip_w'][l] + params['skip_b'][l, 0]
        h = out @ params['res_w'][l] + params['res_b'][l, 0] + right
        skip_acc = skip_acc + skip[:, new_len - t_final:]
        cur_len = new_len
    total = skip_acc.sum(axis=1)
    p = jnp.maximum(total, 0.0)
    p = p @ params['post_w1'] + params['post_b1'][0]
    p = jnp.maximum(p, 0.0)
    p = p @ params['post_w2'] + params['post_b2'][0]
    return p


if __name__ == "__main__":
    B, T, D = 2, 16, 8          # batch, sequence length (x_len), feature dim
    res_channels, skip_channels = 32, 16
    dilations = tuple(get_dilations(T))      # x_len=16 -> (1, 2, 4)

    key = jax.random.PRNGKey(0)
    k_x, k_p = jax.random.split(key)
    x = jax.random.normal(k_x, (B, T, D), jnp.float32)
    params = init_params(k_p, D, res_channels, skip_channels, len(dilations))

    ref = wavenet_encoder_ref(x, params, dilations)
    fwd = jax.jit(wavenet_encoder_pallas, static_argnums=(2, 3))

    # f32 compute path: tight check against the PyTorch-equivalent reference.
    out_f32 = jax.block_until_ready(fwd(x, params, dilations, jnp.float32))
    np.testing.assert_allclose(np.asarray(out_f32), np.asarray(ref),
                               rtol=1e-4, atol=1e-4)

    # bf16 compute path (the performance configuration on v6e / v7x).
    out_bf16 = jax.block_until_ready(fwd(x, params, dilations, jnp.bfloat16))
    np.testing.assert_allclose(np.asarray(out_bf16), np.asarray(ref),
                               rtol=5e-2, atol=5e-2)

    print("KERNEL_OK")
</pallas_src>

<mosaic_0001>
module attributes {stable_mosaic.version = 11 : i64} {
  func.func @_wavenet_kernel(%arg0: i32, %arg1: memref<1x16x8xf32, #tpu.memory_space<vmem>>, %arg2: memref<8x32xf32, #tpu.memory_space<vmem>>, %arg3: memref<1x32xf32, #tpu.memory_space<vmem>>, %arg4: memref<3x32x128xf32, #tpu.memory_space<vmem>>, %arg5: memref<3x32x48xf32, #tpu.memory_space<vmem>>, %arg6: memref<3x1x48xf32, #tpu.memory_space<vmem>>, %arg7: memref<1x1x16xf32, #tpu.memory_space<vmem>>, %arg8: memref<16x16xf32, #tpu.memory_space<vmem>>) attributes {dimension_semantics = [#tpu.dimension_semantics<parallel>], iteration_bounds = array<i64: 2>, scalar_prefetch = 0 : i64, scratch_operands = 1 : i64, tpu.core_type = #tpu.core_type<tc>, window_params = [{transform_indices = @transform_0, window_bounds = array<i64: 1, 16, 8>}, {pipeline_mode = #tpu.pipeline_mode<synchronous>, transform_indices = @transform_1, window_bounds = array<i64: 8, 32>}, {pipeline_mode = #tpu.pipeline_mode<synchronous>, transform_indices = @transform_2, window_bounds = array<i64: 1, 32>}, {pipeline_mode = #tpu.pipeline_mode<synchronous>, transform_indices = @transform_3, window_bounds = array<i64: 3, 32, 128>}, {pipeline_mode = #tpu.pipeline_mode<synchronous>, transform_indices = @transform_4, window_bounds = array<i64: 3, 32, 48>}, {pipeline_mode = #tpu.pipeline_mode<synchronous>, transform_indices = @transform_5, window_bounds = array<i64: 3, 1, 48>}, {transform_indices = @transform_6, window_bounds = array<i64: 1, 1, 16>}]} {
    %c0 = arith.constant 0 : index
    %c0_0 = arith.constant 0 : index
    %c0_1 = arith.constant 0 : index
    %0 = vector.load %arg1[%c0, %c0_0, %c0_1] : memref<1x16x8xf32, #tpu.memory_space<vmem>>, vector<1x16x8xf32>
    %1 = vector.shape_cast %0 : vector<1x16x8xf32> to vector<16x8xf32>
    %c0_2 = arith.constant 0 : index
    %c0_3 = arith.constant 0 : index
    %2 = vector.load %arg2[%c0_2, %c0_3] : memref<8x32xf32, #tpu.memory_space<vmem>>, vector<8x32xf32>
    %cst = arith.constant dense<0.000000e+00> : vector<16x32xf32>
    %3 = tpu.matmul %1, %2, %cst {dimension_numbers = #tpu.dot_dimension_numbers<[1], [0], [0], [1], [0, 0, 1, 1], [], []>} : vector<16x8xf32>, vector<8x32xf32>, vector<16x32xf32> -> vector<16x32xf32>
    %c0_4 = arith.constant 0 : index
    %c0_5 = arith.constant 0 : index
    %4 = vector.load %arg3[%c0_4, %c0_5] : memref<1x32xf32, #tpu.memory_space<vmem>>, vector<1x32xf32>
    %5 = vector.broadcast %4 : vector<1x32xf32> to vector<16x32xf32>
    %6 = arith.addf %3, %5 : vector<16x32xf32>
    %cst_6 = arith.constant 0.000000e+00 : f32
    %7 = vector.broadcast %cst_6 : f32 to vector<16x16xf32>
    %c0_7 = arith.constant 0 : index
    %c0_8 = arith.constant 0 : index
    %8 = vector.load %arg8[%c0_7, %c0_8] : memref<16x16xf32, #tpu.memory_space<vmem>>, vector<16x16xf32>
    tpu.vector_store %arg8[%c0_7, %c0_8], %7 {strides = array<i32>} : memref<16x16xf32, #tpu.memory_space<vmem>>, vector<16x16xf32>,
    %c0_9 = arith.constant 0 : index
    %c0_10 = arith.constant 0 : index
    %c0_11 = arith.constant 0 : index
    %9 = vector.load %arg4[%c0_9, %c0_10, %c0_11] : memref<3x32x128xf32, #tpu.memory_space<vmem>>, vector<1x32x128xf32>
    %10 = vector.shape_cast %9 : vector<1x32x128xf32> to vector<32x128xf32>
    %cst_12 = arith.constant dense<0.000000e+00> : vector<16x128xf32>
    %11 = tpu.matmul %6, %10, %cst_12 {dimension_numbers = #tpu.dot_dimension_numbers<[1], [0], [0], [1], [0, 0, 1, 1], [], []>} : vector<16x32xf32>, vector<32x128xf32>, vector<16x128xf32> -> vector<16x128xf32>
    %12 = vector.extract_strided_slice %11 {offsets = [0, 0], sizes = [16, 64], strides = [1, 1]} : vector<16x128xf32> to vector<16x64xf32>
    %c1_i32 = arith.constant 1 : i32
    %13 = tpu.dynamic_rotate %12 by %c1_i32 dim 0 : vector<16x64xf32>, i32 -> vector<16x64xf32>
    %14 = vector.extract_strided_slice %11 {offsets = [0, 64], sizes = [16, 64], strides = [1, 1]} : vector<16x128xf32> to vector<16x64xf32>
    %15 = arith.addf %13, %14 : vector<16x64xf32>
    %16 = vector.extract_strided_slice %15 {offsets = [0, 0], sizes = [16, 32], strides = [1, 1]} : vector<16x64xf32> to vector<16x32xf32>
    %17 = math.tanh %16 : vector<16x32xf32>
    %18 = vector.extract_strided_slice %15 {offsets = [0, 32], sizes = [16, 32], strides = [1, 1]} : vector<16x64xf32> to vector<16x32xf32>
    %cst_13 = arith.constant 5.000000e-01 : f32
    %19 = vector.broadcast %cst_13 : f32 to vector<16x32xf32>
    %20 = arith.mulf %19, %18 : vector<16x32xf32>
    %21 = math.tanh %20 : vector<16x32xf32>
    %cst_14 = arith.constant 5.000000e-01 : f32
    %22 = vector.broadcast %cst_14 : f32 to vector<16x32xf32>
    %23 = arith.mulf %22, %21 : vector<16x32xf32>
    %cst_15 = arith.constant 5.000000e-01 : f32
    %24 = vector.broadcast %cst_15 : f32 to vector<16x32xf32>
    %25 = arith.addf %23, %24 : vector<16x32xf32>
    %26 = arith.mulf %17, %25 : vector<16x32xf32>
    %c0_16 = arith.constant 0 : index
    %c0_17 = arith.constant 0 : index
    %c0_18 = arith.constant 0 : index
    %27 = vector.load %arg5[%c0_16, %c0_17, %c0_18] : memref<3x32x48xf32, #tpu.memory_space<vmem>>, vector<1x32x48xf32>
    %28 = vector.shape_cast %27 : vector<1x32x48xf32> to vector<32x48xf32>
    %cst_19 = arith.constant dense<0.000000e+00> : vector<16x48xf32>
    %29 = tpu.matmul %26, %28, %cst_19 {dimension_numbers = #tpu.dot_dimension_numbers<[1], [0], [0], [1], [0, 0, 1, 1], [], []>} : vector<16x32xf32>, vector<32x48xf32>, vector<16x48xf32> -> vector<16x48xf32>
    %c0_20 = arith.constant 0 : index
    %c0_21 = arith.constant 0 : index
    %c0_22 = arith.constant 0 : index
    %30 = vector.load %arg6[%c0_20, %c0_21, %c0_22] : memref<3x1x48xf32, #tpu.memory_space<vmem>>, vector<1x1x48xf32>
    %31 = vector.shape_cast %30 : vector<1x1x48xf32> to vector<1x48xf32>
    %32 = vector.broadcast %31 : vector<1x48xf32> to vector<16x48xf32>
    %33 = arith.addf %29, %32 : vector<16x48xf32>
    %34 = vector.extract_strided_slice %33 {offsets = [0, 0], sizes = [16, 32], strides = [1, 1]} : vector<16x48xf32> to vector<16x32xf32>
    %35 = arith.addf %34, %6 : vector<16x32xf32>
    %c0_23 = arith.constant 0 : index
    %c0_24 = arith.constant 0 : index
    %36 = vector.load %arg8[%c0_23, %c0_24] : memref<16x16xf32, #tpu.memory_space<vmem>>, vector<16x16xf32>
    %37 = vector.extract_strided_slice %33 {offsets = [0, 32], sizes = [16, 16], strides = [1, 1]} : vector<16x48xf32> to vector<16x16xf32>
    %38 = arith.addf %36, %37 : vector<16x16xf32>
    %c0_25 = arith.constant 0 : index
    %c0_26 = arith.constant 0 : index
    %39 = vector.load %arg8[%c0_25, %c0_26] : memref<16x16xf32, #tpu.memory_space<vmem>>, vector<16x16xf32>
    tpu.vector_store %arg8[%c0_25, %c0_26], %38 {strides = array<i32>} : memref<16x16xf32, #tpu.memory_space<vmem>>, vector<16x16xf32>,
    %c1 = arith.constant 1 : index
    %c0_27 = arith.constant 0 : index
    %c0_28 = arith.constant 0 : index
    %40 = vector.load %arg4[%c1, %c0_27, %c0_28] : memref<3x32x128xf32, #tpu.memory_space<vmem>>, vector<1x32x128xf32>
    %41 = vector.shape_cast %40 : vector<1x32x128xf32> to vector<32x128xf32>
    %cst_29 = arith.constant dense<0.000000e+00> : vector<16x128xf32>
    %42 = tpu.matmul %35, %41, %cst_29 {dimension_numbers = #tpu.dot_dimension_numbers<[1], [0], [0], [1], [0, 0, 1, 1], [], []>} : vector<16x32xf32>, vector<32x128xf32>, vector<16x128xf32> -> vector<16x128xf32>
    %43 = vector.extract_strided_slice %42 {offsets = [0, 0], sizes = [16, 64], strides = [1, 1]} : vector<16x128xf32> to vector<16x64xf32>
    %c2_i32 = arith.constant 2 : i32
    %44 = tpu.dynamic_rotate %43 by %c2_i32 dim 0 : vector<16x64xf32>, i32 -> vector<16x64xf32>
    %45 = vector.extract_strided_slice %42 {offsets = [0, 64], sizes = [16, 64], strides = [1, 1]} : vector<16x128xf32> to vector<16x64xf32>
    %46 = arith.addf %44, %45 : vector<16x64xf32>
    %47 = vector.extract_strided_slice %46 {offsets = [0, 0], sizes = [16, 32], strides = [1, 1]} : vector<16x64xf32> to vector<16x32xf32>
    %48 = math.tanh %47 : vector<16x32xf32>
    %49 = vector.extract_strided_slice %46 {offsets = [0, 32], sizes = [16, 32], strides = [1, 1]} : vector<16x64xf32> to vector<16x32xf32>
    %cst_30 = arith.constant 5.000000e-01 : f32
    %50 = vector.broadcast %cst_30 : f32 to vector<16x32xf32>
    %51 = arith.mulf %50, %49 : vector<16x32xf32>
    %52 = math.tanh %51 : vector<16x32xf32>
    %cst_31 = arith.constant 5.000000e-01 : f32
    %53 = vector.broadcast %cst_31 : f32 to vector<16x32xf32>
    %54 = arith.mulf %53, %52 : vector<16x32xf32>
    %cst_32 = arith.constant 5.000000e-01 : f32
    %55 = vector.broadcast %cst_32 : f32 to vector<16x32xf32>
    %56 = arith.addf %54, %55 : vector<16x32xf32>
    %57 = arith.mulf %48, %56 : vector<16x32xf32>
    %c1_33 = arith.constant 1 : index
    %c0_34 = arith.constant 0 : index
    %c0_35 = arith.constant 0 : index
    %58 = vector.load %arg5[%c1_33, %c0_34, %c0_35] : memref<3x32x48xf32, #tpu.memory_space<vmem>>, vector<1x32x48xf32>
    %59 = vector.shape_cast %58 : vector<1x32x48xf32> to vector<32x48xf32>
    %cst_36 = arith.constant dense<0.000000e+00> : vector<16x48xf32>
    %60 = tpu.matmul %57, %59, %cst_36 {dimension_numbers = #tpu.dot_dimension_numbers<[1], [0], [0], [1], [0, 0, 1, 1], [], []>} : vector<16x32xf32>, vector<32x48xf32>, vector<16x48xf32> -> vector<16x48xf32>
    %c1_37 = arith.constant 1 : index
    %c0_38 = arith.constant 0 : index
    %c0_39 = arith.constant 0 : index
    %61 = vector.load %arg6[%c1_37, %c0_38, %c0_39] : memref<3x1x48xf32, #tpu.memory_space<vmem>>, vector<1x1x48xf32>
    %62 = vector.shape_cast %61 : vector<1x1x48xf32> to vector<1x48xf32>
    %63 = vector.broadcast %62 : vector<1x48xf32> to vector<16x48xf32>
    %64 = arith.addf %60, %63 : vector<16x48xf32>
    %65 = vector.extract_strided_slice %64 {offsets = [0, 0], sizes = [16, 32], strides = [1, 1]} : vector<16x48xf32> to vector<16x32xf32>
    %66 = arith.addf %65, %35 : vector<16x32xf32>
    %c0_40 = arith.constant 0 : index
    %c0_41 = arith.constant 0 : index
    %67 = vector.load %arg8[%c0_40, %c0_41] : memref<16x16xf32, #tpu.memory_space<vmem>>, vector<16x16xf32>
    %68 = vector.extract_strided_slice %64 {offsets = [0, 32], sizes = [16, 16], strides = [1, 1]} : vector<16x48xf32> to vector<16x16xf32>
    %69 = arith.addf %67, %68 : vector<16x16xf32>
    %c0_42 = arith.constant 0 : index
    %c0_43 = arith.constant 0 : index
    %70 = vector.load %arg8[%c0_42, %c0_43] : memref<16x16xf32, #tpu.memory_space<vmem>>, vector<16x16xf32>
    tpu.vector_store %arg8[%c0_42, %c0_43], %69 {strides = array<i32>} : memref<16x16xf32, #tpu.memory_space<vmem>>, vector<16x16xf32>,
    %c2 = arith.constant 2 : index
    %c0_44 = arith.constant 0 : index
    %c0_45 = arith.constant 0 : index
    %71 = vector.load %arg4[%c2, %c0_44, %c0_45] : memref<3x32x128xf32, #tpu.memory_space<vmem>>, vector<1x32x128xf32>
    %72 = vector.shape_cast %71 : vector<1x32x128xf32> to vector<32x128xf32>
    %cst_46 = arith.constant dense<0.000000e+00> : vector<16x128xf32>
    %73 = tpu.matmul %66, %72, %cst_46 {dimension_numbers = #tpu.dot_dimension_numbers<[1], [0], [0], [1], [0, 0, 1, 1], [], []>} : vector<16x32xf32>, vector<32x128xf32>, vector<16x128xf32> -> vector<16x128xf32>
    %74 = vector.extract_strided_slice %73 {offsets = [0, 0], sizes = [16, 64], strides = [1, 1]} : vector<16x128xf32> to vector<16x64xf32>
    %c4_i32 = arith.constant 4 : i32
    %75 = tpu.dynamic_rotate %74 by %c4_i32 dim 0 : vector<16x64xf32>, i32 -> vector<16x64xf32>
    %76 = vector.extract_strided_slice %73 {offsets = [0, 64], sizes = [16, 64], strides = [1, 1]} : vector<16x128xf32> to vector<16x64xf32>
    %77 = arith.addf %75, %76 : vector<16x64xf32>
    %78 = vector.extract_strided_slice %77 {offsets = [0, 0], sizes = [16, 32], strides = [1, 1]} : vector<16x64xf32> to vector<16x32xf32>
    %79 = math.tanh %78 : vector<16x32xf32>
    %80 = vector.extract_strided_slice %77 {offsets = [0, 32], sizes = [16, 32], strides = [1, 1]} : vector<16x64xf32> to vector<16x32xf32>
    %cst_47 = arith.constant 5.000000e-01 : f32
    %81 = vector.broadcast %cst_47 : f32 to vector<16x32xf32>
    %82 = arith.mulf %81, %80 : vector<16x32xf32>
    %83 = math.tanh %82 : vector<16x32xf32>
    %cst_48 = arith.constant 5.000000e-01 : f32
    %84 = vector.broadcast %cst_48 : f32 to vector<16x32xf32>
    %85 = arith.mulf %84, %83 : vector<16x32xf32>
    %cst_49 = arith.constant 5.000000e-01 : f32
    %86 = vector.broadcast %cst_49 : f32 to vector<16x32xf32>
    %87 = arith.addf %85, %86 : vector<16x32xf32>
    %88 = arith.mulf %79, %87 : vector<16x32xf32>
    %c2_50 = arith.constant 2 : index
    %c0_51 = arith.constant 0 : index
    %c0_52 = arith.constant 0 : index
    %89 = vector.load %arg5[%c2_50, %c0_51, %c0_52] : memref<3x32x48xf32, #tpu.memory_space<vmem>>, vector<1x32x48xf32>
    %90 = vector.shape_cast %89 : vector<1x32x48xf32> to vector<32x48xf32>
    %cst_53 = arith.constant dense<0.000000e+00> : vector<16x48xf32>
    %91 = tpu.matmul %88, %90, %cst_53 {dimension_numbers = #tpu.dot_dimension_numbers<[1], [0], [0], [1], [0, 0, 1, 1], [], []>} : vector<16x32xf32>, vector<32x48xf32>, vector<16x48xf32> -> vector<16x48xf32>
    %c2_54 = arith.constant 2 : index
    %c0_55 = arith.constant 0 : index
    %c0_56 = arith.constant 0 : index
    %92 = vector.load %arg6[%c2_54, %c0_55, %c0_56] : memref<3x1x48xf32, #tpu.memory_space<vmem>>, vector<1x1x48xf32>
    %93 = vector.shape_cast %92 : vector<1x1x48xf32> to vector<1x48xf32>
    %94 = vector.broadcast %93 : vector<1x48xf32> to vector<16x48xf32>
    %95 = arith.addf %91, %94 : vector<16x48xf32>
    %c0_57 = arith.constant 0 : index
    %c0_58 = arith.constant 0 : index
    %96 = vector.load %arg8[%c0_57, %c0_58] : memref<16x16xf32, #tpu.memory_space<vmem>>, vector<16x16xf32>
    %97 = vector.extract_strided_slice %95 {offsets = [0, 32], sizes = [16, 16], strides = [1, 1]} : vector<16x48xf32> to vector<16x16xf32>
    %98 = arith.addf %96, %97 : vector<16x16xf32>
    %c0_59 = arith.constant 0 : index
    %c0_60 = arith.constant 0 : index
    %99 = vector.load %arg8[%c0_59, %c0_60] : memref<16x16xf32, #tpu.memory_space<vmem>>, vector<16x16xf32>
    tpu.vector_store %arg8[%c0_59, %c0_60], %98 {strides = array<i32>} : memref<16x16xf32, #tpu.memory_space<vmem>>, vector<16x16xf32>,
    %100 = tpu.iota {dimensions = array<i32: 0>} : vector<16x1xi32>
    %c7_i32 = arith.constant 7 : i32
    %101 = vector.broadcast %c7_i32 : i32 to vector<16x1xi32>
    %102 = arith.cmpi sge, %100, %101 : vector<16x1xi32>
    %c0_61 = arith.constant 0 : index
    %c0_62 = arith.constant 0 : index
    %103 = vector.load %arg8[%c0_61, %c0_62] : memref<16x16xf32, #tpu.memory_space<vmem>>, vector<16x16xf32>
    %cst_63 = arith.constant 0.000000e+00 : f32
    %104 = vector.shape_cast %102 : vector<16x1xi1> to vector<16x1xi1>
    %105 = vector.broadcast %104 : vector<16x1xi1> to vector<16x16xi1>
    %106 = vector.broadcast %cst_63 : f32 to vector<16x16xf32>
    %107 = arith.select %105, %103, %106 : vector<16x16xi1>, vector<16x16xf32>
    %cst_64 = arith.constant dense<0.000000e+00> : vector<16xf32>
    %108 = vector.multi_reduction <add>, %107, %cst_64 [0] : vector<16x16xf32> to vector<16xf32>
    %109 = vector.shape_cast %108 : vector<16xf32> to vector<1x16xf32>
    %c0_65 = arith.constant 0 : index
    %c0_66 = arith.constant 0 : index
    %c0_67 = arith.constant 0 : index
    %110 = vector.load %arg7[%c0_65, %c0_66, %c0_67] : memref<1x1x16xf32, #tpu.memory_space<vmem>>, vector<1x1x16xf32>
    %111 = vector.shape_cast %110 : vector<1x1x16xf32> to vector<1x16xf32>
    %112 = vector.shape_cast %109 : vector<1x16xf32> to vector<1x1x16xf32>
    tpu.vector_store %arg7[%c0_65, %c0_66, %c0_67], %112 {strides = array<i32>} : memref<1x1x16xf32, #tpu.memory_space<vmem>>, vector<1x1x16xf32>,
    return
  }
  func.func @transform_0(%arg0: i32) -> (i32, i32, i32) {
    %c0_i32 = arith.constant 0 : i32
    %c0_i32_0 = arith.constant 0 : i32
    %c0_i32_1 = arith.constant 0 : i32
    return %arg0, %c0_i32, %c0_i32_0 : i32, i32, i32
  }
  func.func @transform_1(%arg0: i32) -> (i32, i32) {
    %c0_i32 = arith.constant 0 : i32
    %c0_i32_0 = arith.constant 0 : i32
    %c0_i32_1 = arith.constant 0 : i32
    return %c0_i32, %c0_i32_0 : i32, i32
  }
  func.func @transform_2(%arg0: i32) -> (i32, i32) {
    %c0_i32 = arith.constant 0 : i32
    %c0_i32_0 = arith.constant 0 : i32
    %c0_i32_1 = arith.constant 0 : i32
    return %c0_i32, %c0_i32_0 : i32, i32
  }
  func.func @transform_3(%arg0: i32) -> (i32, i32, i32) {
    %c0_i32 = arith.constant 0 : i32
    %c0_i32_0 = arith.constant 0 : i32
    %c0_i32_1 = arith.constant 0 : i32
    %c0_i32_2 = arith.constant 0 : i32
    return %c0_i32, %c0_i32_0, %c0_i32_1 : i32, i32, i32
  }
  func.func @transform_4(%arg0: i32) -> (i32, i32, i32) {
    %c0_i32 = arith.constant 0 : i32
    %c0_i32_0 = arith.constant 0 : i32
    %c0_i32_1 = arith.constant 0 : i32
    %c0_i32_2 = arith.constant 0 : i32
    return %c0_i32, %c0_i32_0, %c0_i32_1 : i32, i32, i32
  }
  func.func @transform_5(%arg0: i32) -> (i32, i32, i32) {
    %c0_i32 = arith.constant 0 : i32
    %c0_i32_0 = arith.constant 0 : i32
    %c0_i32_1 = arith.constant 0 : i32
    %c0_i32_2 = arith.constant 0 : i32
    return %c0_i32, %c0_i32_0, %c0_i32_1 : i32, i32, i32
  }
  func.func @transform_6(%arg0: i32) -> (i32, i32, i32) {
    %c0_i32 = arith.constant 0 : i32
    %c0_i32_0 = arith.constant 0 : i32
    %c0_i32_1 = arith.constant 0 : i32
    return %arg0, %c0_i32, %c0_i32_0 : i32, i32, i32
  }
}

</mosaic_0001>

<bundles_post_ra>
// kernel: wavenet_encoder_pallas.1
= control target key start
LH: loop header
LB: loop body
LE: loop exit
PB: predicated region body
PF: predicated region fallthrough
CT: control target
= control target key end

     0   :  { %s859_s21 = smov 0   ;;  %s1032_s0 = inlined_call_operand.vmem [shape: f32[2,16,8], index: 0, kind: input, shape index: {}]   ;;  %s1033_s1 = inlined_call_operand.vmem [shape: f32[8,32], index: 1, kind: input, shape index: {}]   ;;  %s1034_s2 = inlined_call_operand.vmem [shape: f32[1,32], index: 2, kind: input, shape index: {}]   ;;  %s1035_s3 = inlined_call_operand.vmem [shape: f32[3,32,128], index: 3, kind: input, shape index: {}]   ;;  %s1036_s4 = inlined_call_operand.vmem [shape: f32[3,32,48], index: 4, kind: input, shape index: {}]   ;;  %s1037_s5 = inlined_call_operand.vmem [shape: f32[3,1,48], index: 5, kind: input, shape index: {}]   ;;  %s1038_s6 = inlined_call_operand.vmem [shape: f32[2,1,16], index: 6, kind: output, shape index: {}]  }
   0x1 LB: > { %s727_s22 = sadd.s32 4294967295, %s819_s21   ;;  %p731_p0 = scmp.ge.s32.totalorder %s819_s21, 1  ;;  %s819_s21 = sphi %s859_s21, %s16_s21  }
   0x2   : > { %p212_p1 = scmp.lt.s32.totalorder %s819_s21, 3 }
   0x4   : > { %p213_p2 = pnand %p731_p0, %p212_p1 }
   0x5   : > { %p240_p3 = scmp.lt.s32.totalorder (!%p213_p2), %s727_s22, 1  ;;  %s821_s15 = smov (!%p213_p2), 64  }
   0x6   : > { %216 = sbr.rel (%p213_p2) target bundleno = 1761 (0x6e1), region = 44  ;;  %s822_s24 = smov (!%p213_p2), 96  }
   0xb   : > { %v250_v0 = vld [vmem:[%s1033_s1] sm:$0xff]  ;;  %v291_v1 = vld [vmem:[%s1035_s3 + $0x18] sm:$0xff]  ;;  %v290_v2 = vld [vmem:[%s1035_s3 + $0x10] sm:$0xff]  ;;  %s1040_s22 = smov (!%p240_p3, %s727_s22), 1  ;;  %vm255_vm0 = vcmask 64512   ;;  %vm292_vm1 = vcmask 261120   ;;  %v324_v14 = vlaneseq }
   0xc   : > { %277 = vmatpush.msra.mxu0 %v250_v0  ;;  %311 = vmatpush.msra.mxu1 %v291_v1  ;;  %s768_s29 = sshll.u32 %s1040_s22, 4  ;;  %v289_v5 = vld [vmem:[%s1035_s3 + $0x8] sm:$0xff]  ;;  %v288_v6 = vld [vmem:[%s1035_s3] sm:$0xff]  ;;  %v362_v18 = vld [vmem:[%s1036_s4 + $0x18] sm:$0xff]  ;;  %vm285_vm5 = vcmask 130048   ;;  %s247_s25 = scalar_lea.vmem %s1038_s6, %s1040_s22  ;;  %vm678_vm6 = vcmask 122880  }
   0xd   : > { %770 = vmatpush.msra.mxu3 %v291_v1  ;;  %s244_s8 = scalar_lea.vmem %s1032_s0, %s768_s29  ;;  %v785_v7 = vld [vmem:[%s1034_s2] ss:$0 sm:$0xff]  ;;  %v901_v15 = vshrl.u32 %v324_v14, 7  ;;  %v361_v19 = vld [vmem:[%s1036_s4 + $0x10] sm:$0xff]  ;;  %385 = vmatpush.msra.mxu2 %v362_v18  ;;  %v360_v22 = vld [vmem:[%s1036_s4 + $0x8] sm:$0xff] }
   0xe   : > { %312 = vmatpush.msra.mxu1 %v290_v2  ;;  %v248_v3 = vld [vmem:[%s244_s8] sm:$0xff]  ;;  %v249_v4 = vld [vmem:[%s244_s8 + $0x8] sm:$0xff]  ;;  %v743_v36 = vld [vmem:[%s1035_s3 + $0x38] sm:$0xff] }
   0xf   : > { %771 = vmatpush.msra.mxu3 %v290_v2  ;;  %734 = vmatmul.msk.f32.vlgmr.msra.gmra.mxu0 %vm255_vm0, %v248_v3  ;;  %vm326_vm2 = vcmp.lt.s32.totalorder %v901_v15, 1  ;;  %v359_v35 = vld [vmem:[%s1036_s4] sm:$0xff]  ;;  %v742_v37 = vld [vmem:[%s1035_s3 + $0x30] sm:$0xff]  ;;  %v741_v44 = vld [vmem:[%s1035_s3 + $0x28] sm:$0xff]  ;;  %vm448_vm3 = vcmp.lt.s32.totalorder %v901_v15, 2  ;;  %vm572_vm4 = vcmp.lt.s32.totalorder %v901_v15, 4 }
  0x10   : > { %313 = vmatpush.msra.mxu1 %v289_v5  ;;  %386 = vmatpush.msra.mxu2 %v361_v19  ;;  %v740_v45 = vld [vmem:[%s1035_s3 + $0x20] sm:$0xff]  ;;  %v749_v59 = vld [vmem:[%s1036_s4 + $0x38] sm:$0xff]  ;;  %v748_v60 = vld [vmem:[%s1036_s4 + $0x30] sm:$0xff] }
  0x11   : > { %772 = vmatpush.msra.mxu3 %v289_v5  ;;  %v786_v46 = vld [vmem:[%s1037_s5] ss:$0 sm:$0xff]  ;;  %509 = vmatpush.msrb.mxu0 %v749_v59  ;;  %v747_v62 = vld [vmem:[%s1036_s4 + $0x28] sm:$0xff] }
  0x12   : > { %314 = vmatpush.msra.mxu1 %v288_v6  ;;  %387 = vmatpush.msra.mxu2 %v360_v22  ;;  %v746_v0 = vld [vmem:[%s1036_s4 + $0x20] sm:$0xff] }
  0x13   : > { %773 = vmatpush.msra.mxu3 %v288_v6  ;;  %510 = vmatpush.msrb.mxu0 %v748_v60  ;;  %v787_v22 = vld [vmem:[%s1037_s5 + $0x1] ss:$0 sm:$0xff] }
  0x14   : > { %388 = vmatpush.msra.mxu2 %v359_v35 }
  0x15   : > { %435 = vmatpush.msrb.mxu3 %v743_v36  ;;  %511 = vmatpush.msrb.mxu0 %v747_v62 }
  0x17   : > { %735 = vmatmul.msk.f32.gmra.mxu0 %vm255_vm0, %v249_v4  ;;  %436 = vmatpush.msrb.mxu3 %v742_v37 }
  0x18   : > { %512 = vmatpush.msrb.mxu0 %v746_v0 }
  0x19   : > { %437 = vmatpush.msrb.mxu3 %v741_v44  ;;  %v759_v44 = vld [vmem:[%s1036_s4 + $0x40] sm:$0xff] }
  0x1b   : > { %438 = vmatpush.msrb.mxu3 %v740_v45 }
  0x8c   : > { %v279_v8 = vpop.f32.mrf.mxu0 }
  0x8d   : > { %v891_v9 = vadd.f32 %v785_v7, %v279_v8 }
  0x8f   : > { %736 = vmatmul.msk.f32.vlgmr.msra.gmra.mxu1 %vm292_vm1, %v891_v9 }
  0x94   : > { %v282_v10 = vpop.f32.mrf.mxu0 }
  0x95   : > { %v895_v11 = vadd.f32 %v785_v7, %v282_v10 }
  0x97   : > { %737 = vmatmul.msk.f32.vlgmr.msra.gmra.mxu3 %vm292_vm1, %v895_v11 }
 0x10c   : > { %v316_v12 = vpop.f32.mrf.mxu1 }
 0x10d   : > { %331 = vrot.lane.b32.xlu0 %v316_v12, %s821_s15  ;;  %v322_v17 = vrot.slane %v316_v12, 7  ;;  %v755_v12 = vld [vmem:[%s1035_s3 + $0x50] sm:$0xff] }
 0x11a   : > { %v319_v13 = vpop.f32.mrf.mxu3 }
 0x11b   : > { %333 = vrot.lane.b32.xlu0 %v319_v13, %s821_s15  ;;  %v323_v16 = vrot.slane %v319_v13, 7 }
 0x11d   : > { %v328_v21 = vsel %vm326_vm2, %v323_v16, %v322_v17  ;;  %v327_v28 = vsel %vm326_vm2, %v322_v17, %v323_v16 }
 0x17f   : > { %v332_v20 = vpop.permute.xlu0 %331 }
 0x180   : > { %v337_v23 = vadd.f32 %v332_v20, %v328_v21  ;;  %v754_v20 = vld [vmem:[%s1035_s3 + $0x48] sm:$0xff]  ;;  %v753_v21 = vld [vmem:[%s1035_s3 + $0x40] sm:$0xff] }
 0x182   : > { %v341_v24 = vmul.f32 0.5, %v337_v23 }
 0x184   : > { %789 = vtanh.f32 %v341_v24 }
 0x18a   : > { %v790_v25 = vpop.eup %789 }
 0x18b   : > { %v345_v26 = vmul.f32 0.5, %v790_v25 }
 0x18d   : > { %v334_v27 = vpop.permute.xlu0 %333  ;;  %v347_v29 = vadd.f32 0.5, %v345_v26 }
 0x18e   : > { %v338_v30 = vadd.f32 %v334_v27, %v327_v28 }
 0x18f   : > { %351 = vrot.lane.b32.xlu1 %v347_v29, %s822_s24 }
 0x190   : > { %v342_v31 = vmul.f32 0.5, %v338_v30 }
 0x192   : > { %791 = vtanh.f32 %v342_v31 }
 0x193   : > { %793 = vtanh.f32 %v337_v23 }
 0x194   : > { %795 = vtanh.f32 %v338_v30 }
 0x198   : > { %v792_v32 = vpop.eup %791 }
 0x199   : > { %v346_v33 = vmul.f32 0.5, %v792_v32  ;;  %v794_v38 = vpop.eup %793 }
 0x19a   : > { %v796_v41 = vpop.eup %795 }
 0x19b   : > { %v348_v34 = vadd.f32 0.5, %v346_v33 }
 0x19d   : > { %353 = vrot.lane.b32.xlu1 %v348_v34, %s822_s24 }
 0x201   : > { %v352_v39 = vpop.permute.xlu1 %351 }
 0x202   : > { %v357_v40 = vmul.f32 %v794_v38, %v352_v39  ;;  %v823_v38 = vmov 0.0  }
 0x203   : > { %286 = vst.msk [vmem:[#allocation2] sm:$0xff] %vm285_vm5, %v823_v38 }
 0x204   : > { %738 = vmatmul.msk.f32.vlgmr.msra.gmra.mxu2 %vm292_vm1, %v357_v40  ;;  %287 = vst.msk [vmem:[#allocation2 + $0x8] sm:$0xff] %vm285_vm5, %v823_v38 }
 0x20f   : > { %v354_v42 = vpop.permute.xlu1 %353 }
 0x210   : > { %v358_v43 = vmul.f32 %v796_v41, %v354_v42  ;;  %v762_v41 = vld [vmem:[%s1036_s4 + $0x58] sm:$0xff]  ;;  %v761_v42 = vld [vmem:[%s1036_s4 + $0x50] sm:$0xff] }
 0x211   : > { %633 = vmatpush.msrb.mxu2 %v762_v41 }
 0x212   : > { %739 = vmatmul.msk.f32.gmra.mxu2 %vm292_vm1, %v358_v43  ;;  %v760_v43 = vld [vmem:[%s1036_s4 + $0x48] sm:$0xff] }
 0x213   : > { %634 = vmatpush.msrb.mxu2 %v761_v42 }
 0x215   : > { %635 = vmatpush.msrb.mxu2 %v760_v43 }
 0x217   : > { %636 = vmatpush.msrb.mxu2 %v759_v44 }
 0x287   : > { %v390_v47 = vpop.f32.mrf.mxu2 }
 0x288   : > { %v939_v48 = vadd.f32 %v786_v46, %v390_v47 }
 0x28a   : > { %v396_v49 = vadd.f32 %v939_v48, %v891_v9 }
 0x28c   : > { %744 = vmatmul.msk.f32.vlgmr.msrb.gmra.mxu3 %vm292_vm1, %v396_v49 }
 0x295   : > { %v393_v50 = vpop.f32.mrf.mxu2 }
 0x296   : > { %v944_v51 = vadd.f32 %v786_v46, %v393_v50 }
 0x298   : > { %v397_v52 = vadd.f32 %v944_v51, %v895_v11  ;;  %v756_v11 = vld [vmem:[%s1035_s3 + $0x58] sm:$0xff] }
 0x299   : > { %559 = vmatpush.msrb.mxu1 %v756_v11 }
 0x29a   : > { %745 = vmatmul.msk.f32.gmra.mxu3 %vm292_vm1, %v397_v52 }
 0x29b   : > { %560 = vmatpush.msrb.mxu1 %v755_v12 }
 0x29d   : > { %561 = vmatpush.msrb.mxu1 %v754_v20 }
 0x29f   : > { %562 = vmatpush.msrb.mxu1 %v753_v21 }
 0x30f   : > { %v440_v53 = vpop.f32.mrf.mxu3 }
 0x310   : > { %453 = vrot.lane.b32.xlu2 %v440_v53, %s821_s15  ;;  %v446_v55 = vrot.slane %v440_v53, 6 }
 0x31d   : > { %v443_v54 = vpop.f32.mrf.mxu3 }
 0x31e   : > { %v447_v56 = vrot.slane %v443_v54, 6  ;;  %455 = vrot.lane.b32.xlu2 %v443_v54, %s821_s15 }
 0x320   : > { %v450_v57 = vsel %vm448_vm3, %v447_v56, %v446_v55  ;;  %v449_v58 = vsel %vm448_vm3, %v446_v55, %v447_v56 }
 0x36a   : > { %v454_v61 = vpop.permute.xlu2 %453 }
 0x36b   : > { %v459_v63 = vadd.f32 %v454_v61, %v450_v57  ;;  %v399_v57 = vld [vmem:[#allocation2 + $0x8] sm:$0xff] }
 0x36d   : > { %v463_v1 = vmul.f32 0.5, %v459_v63 }
 0x36f   : > { %797 = vtanh.f32 %v463_v1 }
 0x375   : > { %v798_v2 = vpop.eup %797 }
 0x376   : > { %v467_v3 = vmul.f32 0.5, %v798_v2 }
 0x378   : > { %v456_v4 = vpop.permute.xlu2 %455  ;;  %v469_v5 = vadd.f32 0.5, %v467_v3 }
 0x379   : > { %v460_v6 = vadd.f32 %v456_v4, %v449_v58 }
 0x37a   : > { %473 = vrot.lane.b32.xlu0 %v469_v5, %s822_s24  ;;  %v788_v5 = vld [vmem:[%s1037_s5 + $0x2] ss:$0 sm:$0xff] }
 0x37b   : > { %v464_v7 = vmul.f32 0.5, %v460_v6 }
 0x37d   : > { %799 = vtanh.f32 %v464_v7 }
 0x37e   : > { %801 = vtanh.f32 %v459_v63 }
 0x37f   : > { %803 = vtanh.f32 %v460_v6 }
 0x383   : > { %v800_v8 = vpop.eup %799 }
 0x384   : > { %v468_v9 = vmul.f32 0.5, %v800_v8  ;;  %v802_v13 = vpop.eup %801 }
 0x385   : > { %v804_v17 = vpop.eup %803 }
 0x386   : > { %v470_v10 = vadd.f32 0.5, %v468_v9 }
 0x388   : > { %475 = vrot.lane.b32.xlu1 %v470_v10, %s822_s24 }
 0x3ec   : > { %v474_v14 = vpop.permute.xlu0 %473 }
 0x3ed   : > { %v479_v16 = vmul.f32 %v802_v13, %v474_v14 }
 0x3ef   : > { %751 = vmatmul.msk.f32.vlgmr.msrb.gmra.mxu0 %vm292_vm1, %v479_v16 }
 0x3fa   : > { %v476_v18 = vpop.permute.xlu1 %475 }
 0x3fb   : > { %v480_v19 = vmul.f32 %v804_v17, %v476_v18 }
 0x3fd   : > { %752 = vmatmul.msk.f32.gmra.mxu0 %vm292_vm1, %v480_v19 }
 0x46c   : > { %v514_v23 = vpop.f32.mrf.mxu0 }
 0x46d   : > { %v515_v24 = vadd.f32 %v787_v22, %v514_v23 }
 0x46f   : > { %v520_v25 = vadd.f32 %v515_v24, %v396_v49 }
 0x471   : > { %757 = vmatmul.msk.f32.vlgmr.msrb.gmra.mxu1 %vm292_vm1, %v520_v25 }
 0x47a   : > { %v517_v26 = vpop.f32.mrf.mxu0 }
 0x47b   : > { %v518_v27 = vadd.f32 %v787_v22, %v517_v26 }
 0x47d   : > { %v521_v28 = vadd.f32 %v518_v27, %v397_v52 }
 0x47f   : > { %758 = vmatmul.msk.f32.gmra.mxu1 %vm292_vm1, %v521_v28 }
 0x4ee   : > { %v564_v29 = vpop.f32.mrf.mxu1 }
 0x4ef   : > { %577 = vrot.lane.b32.xlu2 %v564_v29, %s821_s15  ;;  %v570_v31 = vrot.slane %v564_v29, 4 }
 0x4fc   : > { %v567_v30 = vpop.f32.mrf.mxu1 }
 0x4fd   : > { %v571_v32 = vrot.slane %v567_v30, 4  ;;  %579 = vrot.lane.b32.xlu0 %v567_v30, %s821_s15 }
 0x4ff   : > { %v574_v33 = vsel %vm572_vm4, %v571_v32, %v570_v31  ;;  %v573_v34 = vsel %vm572_vm4, %v570_v31, %v571_v32 }
 0x505   : > { %402 = vrot.lane.b32.xlu0 %v939_v48, %s822_s24  ;;  %v398_v48 = vld [vmem:[#allocation2] sm:$0xff] }
 0x50d   : > { %528 = vrot.lane.b32.xlu0 %v518_v27, %s822_s24 }
 0x549   : > { %v578_v35 = vpop.permute.xlu2 %577 }
 0x54a   : > { %v583_v36 = vadd.f32 %v578_v35, %v574_v33 }
 0x54c   : > { %v587_v37 = vmul.f32 0.5, %v583_v36 }
 0x54e   : > { %805 = vtanh.f32 %v587_v37 }
 0x554   : > { %v806_v15 = vpop.eup %805 }
 0x555   : > { %v591_v39 = vmul.f32 0.5, %v806_v15 }
 0x557   : > { %v593_v40 = vadd.f32 0.5, %v591_v39 }
 0x559   : > { %597 = vrot.lane.b32.xlu1 %v593_v40, %s822_s24 }
 0x561   : > { %404 = vrot.lane.b32.xlu1 %v944_v51, %s822_s24 }
 0x56f   : > { %v580_v45 = vpop.permute.xlu0 %579 }
 0x570   : > { %v584_v46 = vadd.f32 %v580_v45, %v573_v34 }
 0x572   : > { %v588_v47 = vmul.f32 0.5, %v584_v46 }
 0x574   : > { %807 = vtanh.f32 %v588_v47 }
 0x575   : > { %809 = vtanh.f32 %v583_v36 }
 0x576   : > { %811 = vtanh.f32 %v584_v46 }
 0x577   : > { %v403_v49 = vpop.permute.xlu0 %402 }
 0x578   : > { %v408_v50 = vadd.f32 %v403_v49, %v398_v48 }
 0x57a   : > { %v808_v51 = vpop.eup %807  ;;  %410 = vst.msk [vmem:[#allocation2] sm:$0xff] %vm285_vm5, %v408_v50 }
 0x57b   : > { %v592_v52 = vmul.f32 0.5, %v808_v51  ;;  %v810_v54 = vpop.eup %809 }
 0x57c   : > { %v812_v60 = vpop.eup %811 }
 0x57d   : > { %v594_v53 = vadd.f32 0.5, %v592_v52 }
 0x57f   : > { %599 = vrot.lane.b32.xlu2 %v594_v53, %s822_s24  ;;  %v529_v63 = vpop.permute.xlu0 %528 }
 0x581   : > { %v522_v2 = vld [vmem:[#allocation2] sm:$0xff] }
 0x587   : > { %526 = vrot.lane.b32.xlu2 %v515_v24, %s822_s24 }
 0x5cb   : > { %v598_v55 = vpop.permute.xlu1 %597 }
 0x5cc   : > { %v603_v56 = vmul.f32 %v810_v54, %v598_v55 }
 0x5ce   : > { %764 = vmatmul.msk.f32.vlgmr.msrb.gmra.mxu2 %vm292_vm1, %v603_v56 }
 0x5d3   : > { %v405_v58 = vpop.permute.xlu1 %404 }
 0x5d4   : > { %v409_v59 = vadd.f32 %v405_v58, %v399_v57 }
 0x5d6   : > { %411 = vst.msk [vmem:[#allocation2 + $0x8] sm:$0xff] %vm285_vm5, %v409_v59 }
 0x5d9   : > { %v600_v61 = vpop.permute.xlu2 %599 }
 0x5da   : > { %v604_v62 = vmul.f32 %v812_v60, %v600_v61 }
 0x5dc   : > { %765 = vmatmul.msk.f32.gmra.mxu2 %vm292_vm1, %v604_v62 }
 0x5dd   : > { %v523_v0 = vld [vmem:[#allocation2 + $0x8] sm:$0xff] }
 0x5de   : > { %v533_v1 = vadd.f32 %v529_v63, %v523_v0 }
 0x5e0   : > { %535 = vst.msk [vmem:[#allocation2 + $0x8] sm:$0xff] %vm285_vm5, %v533_v1 }
 0x5e1   : > { %v527_v3 = vpop.permute.xlu2 %526 }
 0x5e2   : > { %v532_v4 = vadd.f32 %v527_v3, %v522_v2 }
 0x5e4   : > { %534 = vst.msk [vmem:[#allocation2] sm:$0xff] %vm285_vm5, %v532_v4 }
 0x5e7   : > { %v645_v10 = vld [vmem:[#allocation2 + $0x8] sm:$0xff] }
 0x5eb   : > { %v644_v14 = vld [vmem:[#allocation2] sm:$0xff] }
 0x651   : > { %v638_v6 = vpop.f32.mrf.mxu2 }
 0x652   : > { %v639_v7 = vadd.f32 %v788_v5, %v638_v6 }
 0x654   : > { %648 = vrot.lane.b32.xlu1 %v639_v7, %s822_s24 }
 0x65f   : > { %v641_v8 = vpop.f32.mrf.mxu2 }
 0x660   : > { %v642_v9 = vadd.f32 %v788_v5, %v641_v8 }
 0x662   : > { %650 = vrot.lane.b32.xlu2 %v642_v9, %s822_s24 }
 0x6bc   : > { %v651_v11 = vpop.permute.xlu2 %650 }
 0x6bd   : > { %v655_v12 = vadd.f32 %v651_v11, %v645_v10 }
 0x6bf   : > { %657 = vst.msk [vmem:[#allocation2 + $0x8] sm:$0xff] %vm285_vm5, %v655_v12 }
 0x6c6   : > { %v649_v13 = vpop.permute.xlu1 %648  ;;  %v662_v17 = vld [vmem:[#allocation2 + $0x8] sm:$0xff] }
 0x6c7   : > { %v654_v16 = vadd.f32 %v649_v13, %v644_v14  ;;  %v670_v19 = vsel %vm285_vm5, %v662_v17, 0.0 }
 0x6c9   : > { %656 = vst.msk [vmem:[#allocation2] sm:$0xff] %vm285_vm5, %v654_v16 }
 0x6d0   : > { %v769_v18 = vld [vmem:[#allocation2] sm:$0x80] }
 0x6d1   : > { %v669_v20 = vsel %vm285_vm5, %v769_v18, 0.0 }
 0x6d2   : > { %v671_v21 = vadd.f32 %v670_v19, %v669_v20 }
 0x6d4   : > { %v672_v22 = vrot.slane %v671_v21, 4 }
 0x6d6   : > { %v673_v23 = vadd.f32 %v672_v22, %v671_v21 }
 0x6d8   : > { %v674_v24 = vrot.slane %v673_v23, 2 }
 0x6da   : > { %v675_v25 = vadd.f32 %v674_v24, %v673_v23 }
 0x6dc   : > { %v676_v26 = vrot.slane %v675_v25, 1 }
 0x6de   : > { %v677_v27 = vadd.f32 %v676_v26, %v675_v25 }
 0x6e0   : > { %679 = vst.msk [vmem:[%s247_s25] sm:$0x1] %vm678_vm6, %v677_v27 }
 0x6e1 PF: > { %s16_s21 = sadd.s32 1, %s819_s21  }
 0x6e2   : > { %p13_p4 = scmp.ge.s32.totalorder %s16_s21, 4  }
 0x6e4   :  { %15 = sbr.rel (!%p13_p4) target bundleno = 1 (0x1), region = 80 }

</bundles_post_ra>
